<compile_context>
chip_gen: v5e
topology: v5e:2x2
jax: 0.10.0
libtpu: 0.0.40
codegen_flags: <defaults>
</compile_context>

<pallas_src>
import jax
import jax.numpy as jnp
from jax.experimental import pallas as pl
from jax.experimental.pallas import tpu as pltpu


def _program_kernel(x_ref, p_ref, o_ref):
    # x_ref: (bt, ft) tile of flattened images
    # p_ref: (1, ft)  matching tile of the flattened perturbation
    # o_ref: (bt, ft) output tile
    t = jnp.tanh(p_ref[...].astype(jnp.float32))               # EUP; broadcast over rows
    y = jnp.clip(x_ref[...].astype(jnp.float32) + t, -1.0, 1.0)
    o_ref[...] = y.astype(o_ref.dtype)


def _physical_vmem_bytes():
    """Best-effort physical VMEM query; conservative (v7x-sized) fallback."""
    try:
        info = pltpu.get_tpu_info()
        v = getattr(info, "vmem_capacity_bytes", None)
        if v:
            return int(v)
    except Exception:
        pass
    return 64 << 20


def _per_buffer_budget(phys_vmem_bytes):
    # v5e/v6e (128 MiB physical VMEM): 6 MiB blocks (fewer per-step overheads);
    # v7x (64 MiB physical): 4 MiB blocks so 4 double-buffers stay well inside.
    return (6 << 20) if phys_vmem_bytes >= (128 << 20) else (4 << 20)


def _choose_tiles(B, F, itemsize, budget_bytes):
    """Pick a (bt, ft) block: lane-dense (ft multiple of 128 or == F), sublane
    aligned (bt multiple of 8 or == B), block <= ~budget, and >= 2 grid steps
    whenever the problem is big enough for the v7x 2-TensorCore split."""
    budget_elems = max(1, budget_bytes // itemsize)

    if B * F <= budget_elems:
        bt, ft = B, F                                    # whole problem, one block
    elif 8 * F <= budget_elems:
        ft = F                                           # full-width rows, tile batch
        bt = max(8, (budget_elems // F // 8) * 8)        # < B here by construction
    else:
        bt = B if B < 8 else 8                           # minimum sublane rows
        ft = max(128, (budget_elems // bt // 128) * 128) # tile the feature dim
        ft = min(ft, F)

    # Megacore: guarantee >= 2 grid steps for problems worth splitting.
    total_bytes = B * F * itemsize
    n_steps = pl.cdiv(B, bt) * pl.cdiv(F, ft)
    if total_bytes > (512 << 10) and n_steps < 2:
        if B >= 16:
            bt = max(8, ((B // 2) // 8) * 8)
        elif F >= 256:
            ft = max(128, ((F // 2) // 128) * 128)
    return bt, ft


def program_forward(image, P):
    """Pallas equivalent of Program.forward: clamp(image + tanh(P), -1, 1).

    image: (B, C, H, W)
    P    : (C, H, W)
    """
    B, C, H, W = image.shape
    assert P.shape == (C, H, W)
    F = C * H * W
    itemsize = jnp.dtype(image.dtype).itemsize

    # Lane-dense layout: trailing dim F instead of W (full-width vector stores).
    x2d = image.reshape(B, F)
    p2d = P.astype(image.dtype).reshape(1, F)

    phys_vmem = _physical_vmem_bytes()
    budget = _per_buffer_budget(phys_vmem)
    bt, ft = _choose_tiles(B, F, itemsize, budget)
    nb, nf = pl.cdiv(B, bt), pl.cdiv(F, ft)

    # Explicit scoped-VMEM limit: double-buffered in/out tiles + pipelined P
    # tile + headroom for Mosaic internal scratch. Prevents the v5e 16 MiB
    # scoped default colliding with the double buffers, and stays <= 3/4 of
    # physical VMEM on every chip.
    tile_bytes = bt * ft * itemsize
    p_tile_bytes = ft * itemsize
    needed = 4 * tile_bytes + 2 * p_tile_bytes
    vmem_limit = int(min(max(needed + (8 << 20), 16 << 20), (phys_vmem * 3) // 4))

    cost = pl.CostEstimate(
        flops=3 * B * F,                       # add + clamp (2 cmp/select)
        transcendentals=nb * nf * ft,          # tanh per (row-chunk, f-chunk) step
        bytes_accessed=2 * B * F * itemsize + F * itemsize,
    )

    out2d = pl.pallas_call(
        _program_kernel,
        out_shape=jax.ShapeDtypeStruct((B, F), image.dtype),
        grid=(nb, nf),
        in_specs=[
            pl.BlockSpec((bt, ft), lambda i, j: (i, j)),
            # P tiled along F (pipelined); Pallas skips the re-fetch when the
            # block index is unchanged between consecutive row-chunk steps.
            pl.BlockSpec((1, ft), lambda i, j: (0, j)),
        ],
        out_specs=pl.BlockSpec((bt, ft), lambda i, j: (i, j)),
        compiler_params=pltpu.CompilerParams(
            # Fully elementwise: every block is independent, so both axes can
            # be sharded across v7x's two TensorCores.
            dimension_semantics=("parallel", "parallel"),
            vmem_limit_bytes=vmem_limit,
        ),
        cost_estimate=cost,
    )(x2d, p2d)

    return out2d.reshape(B, C, H, W)


if __name__ == "__main__":
    # Small shapes consistent with the module's cfg: channels=4, h1=16, w1=16, batch=2.
    B, C, H, W = 2, 4, 16, 16

    key = jax.random.PRNGKey(0)
    k_img, k_p = jax.random.split(key)

    # Input image in roughly [-1, 1]-ish range so the clamp is exercised.
    image = jax.random.uniform(k_img, (B, C, H, W), jnp.float32, minval=-1.5, maxval=1.5)

    # The PyTorch module initializes P to zeros; use a deterministic non-zero
    # perturbation here so tanh/clamp are actually exercised.
    P = 0.5 * jax.random.normal(k_p, (C, H, W), jnp.float32)

    out = program_forward(image, P)
    out = jax.block_until_ready(out)

    # Reference check in plain JAX (same semantics as the PyTorch forward).
    ref = jnp.clip(image + jnp.tanh(P)[None], -1.0, 1.0)
    assert out.shape == (B, C, H, W)
    assert jnp.allclose(out, ref, atol=1e-6), "mismatch vs reference"

    print("KERNEL_OK")
</pallas_src>

<mosaic_0001>
module attributes {stable_mosaic.version = 11 : i64} {
  func.func @_program_kernel(%arg0: i32, %arg1: i32, %arg2: memref<2x1024xf32, #tpu.memory_space<vmem>>, %arg3: memref<1x1024xf32, #tpu.memory_space<vmem>>, %arg4: memref<2x1024xf32, #tpu.memory_space<vmem>>) attributes {dimension_semantics = [#tpu.dimension_semantics<parallel>, #tpu.dimension_semantics<parallel>], iteration_bounds = array<i64: 1, 1>, scalar_prefetch = 0 : i64, scratch_operands = 0 : i64, tpu.core_type = #tpu.core_type<tc>, window_params = [{transform_indices = @transform_0, window_bounds = array<i64: 2, 1024>}, {transform_indices = @transform_1, window_bounds = array<i64: 1, 1024>}, {transform_indices = @transform_2, window_bounds = array<i64: 2, 1024>}]} {
    %c0 = arith.constant 0 : index
    %c0_0 = arith.constant 0 : index
    %0 = vector.load %arg3[%c0, %c0_0] : memref<1x1024xf32, #tpu.memory_space<vmem>>, vector<1x1024xf32>
    %1 = math.tanh %0 : vector<1x1024xf32>
    %c0_1 = arith.constant 0 : index
    %c0_2 = arith.constant 0 : index
    %2 = vector.load %arg2[%c0_1, %c0_2] : memref<2x1024xf32, #tpu.memory_space<vmem>>, vector<2x1024xf32>
    %3 = vector.broadcast %1 : vector<1x1024xf32> to vector<2x1024xf32>
    %4 = arith.addf %2, %3 : vector<2x1024xf32>
    %cst = arith.constant -1.000000e+00 : f32
    %cst_3 = arith.constant 1.000000e+00 : f32
    %5 = vector.broadcast %cst : f32 to vector<2x1024xf32>
    %6 = arith.maximumf %5, %4 : vector<2x1024xf32>
    %7 = vector.broadcast %cst_3 : f32 to vector<2x1024xf32>
    %8 = arith.minimumf %7, %6 : vector<2x1024xf32>
    %c0_4 = arith.constant 0 : index
    %c0_5 = arith.constant 0 : index
    %9 = vector.load %arg4[%c0_4, %c0_5] : memref<2x1024xf32, #tpu.memory_space<vmem>>, vector<2x1024xf32>
    tpu.vector_store %arg4[%c0_4, %c0_5], %8 {strides = array<i32>} : memref<2x1024xf32, #tpu.memory_space<vmem>>, vector<2x1024xf32>,
    return
  }
  func.func @transform_0(%arg0: i32, %arg1: i32) -> (i32, i32) {
    %c0_i32 = arith.constant 0 : i32
    return %arg0, %arg1 : i32, i32
  }
  func.func @transform_1(%arg0: i32, %arg1: i32) -> (i32, i32) {
    %c0_i32 = arith.constant 0 : i32
    %c0_i32_0 = arith.constant 0 : i32
    return %c0_i32, %arg1 : i32, i32
  }
  func.func @transform_2(%arg0: i32, %arg1: i32) -> (i32, i32) {
    %c0_i32 = arith.constant 0 : i32
    return %arg0, %arg1 : i32, i32
  }
}

</mosaic_0001>

<bundles_post_ra>
// kernel: tpu_custom_call.1
= control target key start
LH: loop header
LB: loop body
LE: loop exit
PB: predicated region body
PF: predicated region fallthrough
CT: control target
= control target key end

     0   :  { %7 = vsyncpa [#allocation3], 0  ;;  %s212_s0 = inlined_call_operand.hbm [shape: f32[2,1024], index: 0, kind: input, shape index: {}]   ;;  %s213_s1 = inlined_call_operand.hbm [shape: f32[1,1024], index: 1, kind: input, shape index: {}]   ;;  %s214_s2 = inlined_call_operand.hbm [shape: f32[2,1024], index: 2, kind: output, shape index: {}]  }
   0x1   :  { %8 = vsyncpa [#allocation6], 0 }
   0x2   :  { %9 = vsyncpa [#allocation4], 0  ;;  %s15_s11 = sshll.u32 %s212_s0, 4  ;;  %s181_s12 = smov [#allocation2]   ;;  %s16_s11 = int_to_ptr.hbm [resolvable:$true] %s15_s11 }
   0x3   :  { %s17_s13 = sshll.u32 %s181_s12, 4  ;;  %s26_s16 = sshll.u32 %s213_s1, 4  ;;  %s18_s13 = int_to_ptr.vmem [resolvable:$true] %s17_s13  ;;  %s27_s16 = int_to_ptr.hbm [resolvable:$true] %s26_s16 }
   0x4   :  { %20 = dma.hbm_to_vmem [thread:$0]  %s16_s11, 256, %s18_s13, [#allocation3]  }
   0x5   :  { %s182_s17 = smov [#allocation5]  }
   0x6   :  { %s28_s18 = sshll.u32 %s182_s17, 4  ;;  %s29_s18 = int_to_ptr.vmem [resolvable:$true] %s28_s18 }
   0x7   :  { %31 = dma.hbm_to_vmem [thread:$0]  %s27_s16, 128, %s29_s18, [#allocation6]  }
   0x8   :  { %175 = dma.done.wait [#allocation3], 256  }
   0x9   :  { %176 = vsyncadd [#allocation3], 4294967040 }
   0xa   :  { %177 = dma.done.wait [#allocation6], 128  }
   0xb   :  { %178 = vsyncadd [#allocation6], 4294967168  ;;  %v40_v0 = vld [vmem:[#allocation5] sm:$0xff]  ;;  %vm59_vm0 = vcmask 1041408   ;;  %vm61_vm1 = vcmask 1045508   ;;  %vm63_vm2 = vcmask 1043456  }
   0xc   :  { %101 = vtanh.f32 %v40_v0  ;;  %v42_v13 = vld [vmem:[#allocation2] sm:$0xff]  ;;  %v43_v19 = vld [vmem:[#allocation2 + $0x8] sm:$0xff]  ;;  %s183_s0 = smov [#allocation7]   ;;  %s85_s21 = sshll.u32 %s214_s2, 4  ;;  %s86_s21 = int_to_ptr.hbm [resolvable:$true] %s85_s21 }
   0xd   :  { %s83_s1 = sshll.u32 %s183_s0, 4  ;;  %s84_s1 = int_to_ptr.vmem [resolvable:$true] %s83_s1 }
  0x12   :  { %v102_v1 = vpop.eup %101 }
  0x13   :  { %v45_v2 = vperm.slane %v102_v1, 0  ;;  %v46_v3 = vperm.slane %v102_v1, 1  ;;  %v47_v4 = vperm.slane %v102_v1, 2  ;;  %v48_v5 = vperm.slane %v102_v1, 3 }
  0x14   :  { %v49_v6 = vperm.slane %v102_v1, 4  ;;  %v50_v7 = vperm.slane %v102_v1, 5  ;;  %v51_v8 = vperm.slane %v102_v1, 6  ;;  %v52_v9 = vperm.slane %v102_v1, 7 }
  0x15   :  { %v53_v10 = vrot.slane %v46_v3, 6  ;;  %v54_v11 = vrot.slane %v47_v4, 4  ;;  %v55_v12 = vrot.slane %v48_v5, 2 }
  0x16   :  { %v56_v14 = vrot.slane %v50_v7, 6  ;;  %v57_v15 = vrot.slane %v51_v8, 4  ;;  %v58_v16 = vrot.slane %v52_v9, 2 }
  0x17   :  { %v60_v17 = vsel %vm59_vm0, %v45_v2, %v53_v10  ;;  %v62_v18 = vsel %vm61_vm1, %v54_v11, %v55_v12 }
  0x18   :  { %v64_v20 = vsel %vm63_vm2, %v60_v17, %v62_v18  ;;  %v65_v21 = vsel %vm59_vm0, %v49_v6, %v56_v14  ;;  %v66_v22 = vsel %vm61_vm1, %v57_v15, %v58_v16 }
  0x19   :  { %v70_v23 = vadd.f32 %v64_v20, %v42_v13  ;;  %v67_v24 = vsel %vm63_vm2, %v65_v21, %v66_v22 }
  0x1a   :  { %v71_v25 = vadd.f32 %v67_v24, %v43_v19 }
  0x1b   :  { %v96_v26 = vclamps-f32 %v70_v23, 1.0 }
  0x1c   :  { %v97_v27 = vclamps-f32 %v71_v25, 1.0 }
  0x1d   :  { %76 = vst [vmem:[#allocation7] sm:$0xff] %v96_v26 }
  0x1e   :  { %77 = vst [vmem:[#allocation7 + $0x8] sm:$0xff] %v97_v27 }
  0x1f   :  { %88 = dma.vmem_to_hbm [thread:$0]  %s84_s1, 256, %s86_s21, [#allocation4]  }
  0x20   :  { %179 = dma.done.wait [#allocation4], 256  }
  0x21   :  { %180 = vsyncadd [#allocation4], 4294967040 }
  0x22   :  { %93 = vsyncpa [#allocation3], 1 }
  0x23   :  { %94 = vsyncpa [#allocation6], 1 }
  0x24   :  { %95 = vsyncpa [#allocation4], 1 }

</bundles_post_ra>
